<compile_context>
chip_gen: v5e
topology: v5e:2x2
jax: 0.10.0
libtpu: 0.0.40
codegen_flags: <defaults>
</compile_context>

<pallas_src>
import math

import jax
import jax.numpy as jnp
from jax.experimental import pallas as pl
from jax.experimental.pallas import tpu as pltpu

_MIB = 1024 * 1024


def encoder_kernel(x_ref, w_ref, b_ref, o_ref):
    """One (feature-tile, batch-tile) block of the encoder forward.

    x_ref : (tb, K)    flattened activations (K = L*D), streamed per F tile
    w_ref : (K, tf)    flattened encoder weight slab, resident across batch tiles
    b_ref : (1, tf)    encoder bias slab (f32)
    o_ref : (tb, tf)   output features
    """
    acc = jnp.dot(x_ref[...], w_ref[...], preferred_element_type=jnp.float32)
    acc = acc + b_ref[...]                       # (1, tf) broadcasts over rows
    o_ref[...] = jnp.maximum(acc, 0.0).astype(o_ref.dtype)


def _round_up(a, m):
    return (a + m - 1) // m * m


def _vmem_capacity_bytes():
    """Physical VMEM per TensorCore (64 MiB on v7x, 128 MiB on v5e/v6e)."""
    try:
        info = pltpu.get_tpu_info()
        cap = getattr(info, "vmem_capacity_bytes", None)
        if cap:
            return int(cap)
    except Exception:
        pass
    return 64 * _MIB  # conservative fallback (v7x-sized); correct everywhere


def _plan_tiles(B, K, F, x_bytes, w_bytes, o_bytes, *, tb=None, tf=None):
    """Pick (tb, tf, Kp, vmem_limit) so double-buffered tiles fit in VMEM."""
    cap = _vmem_capacity_bytes()
    vmem_limit = max(32 * _MIB, cap - 16 * _MIB)   # ~48 MiB v7x, ~112 MiB v5e/v6e
    budget = vmem_limit - 8 * _MIB                 # headroom for compiler scratch

    Kp = _round_up(max(K, 1), 128)
    sub = 16 if x_bytes < 4 else 8                 # bf16 packs 16 rows per vreg
    tb_cur = tb if tb is not None else min(256, _round_up(max(B, 1), sub))
    assert tb_cur % sub == 0, f"tb must be a multiple of {sub}"

    if tf is not None:
        assert tf % 128 == 0, "tf must be a multiple of 128"
        return tb_cur, tf, Kp, vmem_limit

    while True:
        # double-buffered footprint: x tile + weight slab + bias slab + out tile
        avail = budget // 2 - tb_cur * Kp * x_bytes
        denom = Kp * w_bytes + tb_cur * o_bytes + 4
        tf_fit = (avail // denom // 128) * 128 if avail > 0 else 0
        if tf_fit >= 128:
            tf_cur = int(min(tf_fit, 4096, _round_up(max(F, 1), 128)))
            return tb_cur, tf_cur, Kp, vmem_limit
        if tb is None and tb_cur > sub:
            tb_cur = max(sub, tb_cur // 2)         # shrink batch tile, retry
            continue
        # TODO(synk): for very large K (= num_layers * activation_dim), add a K
        # reduction grid axis with an f32 VMEM accumulator instead of failing.
        raise ValueError(
            f"Encoder tiles do not fit VMEM (K={K}, budget={budget} bytes); "
            "reduce num_layers*activation_dim or add K-tiling.")


def encoder_forward(x, weight, bias, *, encoder_layers=None, select_features=None,
                    compute_dtype=jnp.bfloat16, out_dtype=None, tb=None, tf=None):
    """Pallas implementation of Encoder.forward.

    x      : (B, L_in, D)
    weight : (L, D, F)
    bias   : (F,)
    returns: (B, F_sel)  with F_sel = len(select_features) if given else F
    """
    # Layer / feature selection is cheap gather work -> wrapper-side in JAX.
    # TODO(synk): in a training loop, hoist the select_features gather and the
    # weight cast/pad out of the step function so the (K, F) weight is not
    # re-copied through HBM on every call.
    if encoder_layers is not None:
        x = x[:, jnp.asarray(encoder_layers), :]
    if select_features is not None:
        sel = jnp.asarray(select_features)
        weight = weight[:, :, sel]
        bias = bias[sel]

    B, L, D = x.shape
    Lw, Dw, F = weight.shape
    assert (L, D) == (Lw, Dw), "x layers/dim must match weight"
    if out_dtype is None:
        out_dtype = x.dtype

    K = L * D
    x_bytes = jnp.dtype(compute_dtype).itemsize
    w_bytes = jnp.dtype(compute_dtype).itemsize
    o_bytes = jnp.dtype(out_dtype).itemsize
    tb, tf, Kp, vmem_limit = _plan_tiles(B, K, F, x_bytes, w_bytes, o_bytes,
                                         tb=tb, tf=tf)

    Bp = _round_up(B, tb)
    Fp = _round_up(max(F, 1), tf)

    x2 = x.reshape(B, K).astype(compute_dtype)
    w2 = weight.reshape(K, F).astype(compute_dtype)
    b2 = bias.reshape(1, F).astype(jnp.float32)
    if (Bp, Kp) != (B, K):
        x2 = jnp.pad(x2, ((0, Bp - B), (0, Kp - K)))
    if (Kp, Fp) != (K, F):
        w2 = jnp.pad(w2, ((0, Kp - K), (0, Fp - F)))
    if Fp != F:
        b2 = jnp.pad(b2, ((0, 0), (0, Fp - F)))

    # Real streamed traffic: weight read once (resident per F tile), activations
    # re-read once per F tile, bias once, output written once.
    cost = pl.CostEstimate(
        flops=2 * Bp * Kp * Fp,
        transcendentals=0,
        bytes_accessed=(Kp * Fp * w_bytes
                        + (Fp // tf) * Bp * Kp * x_bytes
                        + Fp * 4
                        + Bp * Fp * o_bytes),
    )

    out = pl.pallas_call(
        encoder_kernel,
        out_shape=jax.ShapeDtypeStruct((Bp, Fp), out_dtype),
        grid_spec=pltpu.PrefetchScalarGridSpec(
            num_scalar_prefetch=0,
            # F (dict) axis OUTER -> the big weight slab is resident across the
            # inner batch axis and is streamed from HBM only once in total.
            grid=(Fp // tf, Bp // tb),
            in_specs=[
                pl.BlockSpec((tb, Kp), lambda j, i: (i, 0)),   # activations (streamed)
                pl.BlockSpec((Kp, tf), lambda j, i: (0, j)),   # weight slab (resident)
                pl.BlockSpec((1, tf), lambda j, i: (0, j)),    # bias slab
            ],
            out_specs=pl.BlockSpec((tb, tf), lambda j, i: (i, j)),
        ),
        compiler_params=pltpu.CompilerParams(
            # No reduction axis -> both parallel; on v7x the outer F axis is
            # split across the two TensorCores so each reads half the weight.
            dimension_semantics=("parallel", "parallel"),
            vmem_limit_bytes=vmem_limit,
        ),
        cost_estimate=cost,
    )(x2, w2, b2)

    return out[:B, :F]


def init_encoder_params(key, activation_dim, dict_size, num_layers):
    """Mirror Encoder.__init__ defaults (same_init_for_all_layers=False,
    norm_init_scale=None): kaiming_uniform_ on (L, D, F) -> fan_in = D * F,
    bound = sqrt(6 / fan_in); bias zeros."""
    fan_in = activation_dim * dict_size
    bound = math.sqrt(6.0 / fan_in)
    weight = jax.random.uniform(
        key, (num_layers, activation_dim, dict_size),
        minval=-bound, maxval=bound, dtype=jnp.float32)
    bias = jnp.zeros((dict_size,), dtype=jnp.float32)
    return weight, bias


def encoder_reference(x, weight, bias, encoder_layers=None, select_features=None,
                      compute_dtype=jnp.float32):
    if encoder_layers is not None:
        x = x[:, jnp.asarray(encoder_layers), :]
    if select_features is not None:
        sel = jnp.asarray(select_features)
        weight = weight[:, :, sel]
        bias = bias[sel]
    f = jnp.einsum("bld,ldf->bf",
                   x.astype(compute_dtype), weight.astype(compute_dtype),
                   preferred_element_type=jnp.float32)
    f = f + bias[None, :].astype(jnp.float32)
    return jnp.maximum(f, 0.0)


if __name__ == "__main__":
    # small shapes consistent with the module:
    # batch=8, num_layers=2, activation_dim=16, dict_size=32
    B, L, D, F = 8, 2, 16, 32

    key = jax.random.PRNGKey(0)
    kx, kw = jax.random.split(key)
    x = jax.random.normal(kx, (B, L, D), dtype=jnp.float32)
    weight, bias = init_encoder_params(kw, D, F, L)

    f = encoder_forward(x, weight, bias)
    f = jax.block_until_ready(f)
    assert f.shape == (B, F)

    # bf16-streamed kernel vs. reference with identical bf16 operands (tight) ...
    ref_bf16 = encoder_reference(x, weight, bias, compute_dtype=jnp.bfloat16)
    assert jnp.allclose(f, ref_bf16, atol=1e-3, rtol=1e-3)
    # ... and vs. the pure-f32 reference (loose; only bf16 streaming error).
    ref_f32 = encoder_reference(x, weight, bias)
    assert jnp.allclose(f, ref_f32, atol=5e-2, rtol=5e-2)

    # feature-selection path (select_features) also goes through the kernel.
    sel = [1, 3, 5, 7]
    f_sel = jax.block_until_ready(encoder_forward(x, weight, bias, select_features=sel))
    assert f_sel.shape == (B, len(sel))
    assert jnp.allclose(f_sel, ref_bf16[:, jnp.asarray(sel)], atol=1e-3, rtol=1e-3)

    print("KERNEL_OK")
</pallas_src>

<mosaic_0001>
module attributes {stable_mosaic.version = 11 : i64} {
  func.func @encoder_kernel(%arg0: i32, %arg1: i32, %arg2: memref<16x128xbf16, #tpu.memory_space<vmem>>, %arg3: memref<128x128xbf16, #tpu.memory_space<vmem>>, %arg4: memref<1x128xf32, #tpu.memory_space<vmem>>, %arg5: memref<16x128xf32, #tpu.memory_space<vmem>>) attributes {dimension_semantics = [#tpu.dimension_semantics<parallel>, #tpu.dimension_semantics<parallel>], iteration_bounds = array<i64: 1, 1>, scalar_prefetch = 0 : i64, scratch_operands = 0 : i64, tpu.core_type = #tpu.core_type<tc>, window_params = [{transform_indices = @transform_0, window_bounds = array<i64: 16, 128>}, {transform_indices = @transform_1, window_bounds = array<i64: 128, 128>}, {transform_indices = @transform_2, window_bounds = array<i64: 1, 128>}, {transform_indices = @transform_3, window_bounds = array<i64: 16, 128>}]} {
    %c0 = arith.constant 0 : index
    %c0_0 = arith.constant 0 : index
    %0 = vector.load %arg2[%c0, %c0_0] : memref<16x128xbf16, #tpu.memory_space<vmem>>, vector<16x128xbf16>
    %c0_1 = arith.constant 0 : index
    %c0_2 = arith.constant 0 : index
    %1 = vector.load %arg3[%c0_1, %c0_2] : memref<128x128xbf16, #tpu.memory_space<vmem>>, vector<128x128xbf16>
    %cst = arith.constant dense<0.000000e+00> : vector<16x128xf32>
    %2 = tpu.matmul %0, %1, %cst {dimension_numbers = #tpu.dot_dimension_numbers<[1], [0], [0], [1], [0, 0, 1, 1], [], []>} : vector<16x128xbf16>, vector<128x128xbf16>, vector<16x128xf32> -> vector<16x128xf32>
    %c0_3 = arith.constant 0 : index
    %c0_4 = arith.constant 0 : index
    %3 = vector.load %arg4[%c0_3, %c0_4] : memref<1x128xf32, #tpu.memory_space<vmem>>, vector<1x128xf32>
    %4 = vector.broadcast %3 : vector<1x128xf32> to vector<16x128xf32>
    %5 = arith.addf %2, %4 : vector<16x128xf32>
    %cst_5 = arith.constant 0.000000e+00 : f32
    %6 = vector.broadcast %cst_5 : f32 to vector<16x128xf32>
    %7 = arith.maximumf %5, %6 : vector<16x128xf32>
    %c0_6 = arith.constant 0 : index
    %c0_7 = arith.constant 0 : index
    %8 = vector.load %arg5[%c0_6, %c0_7] : memref<16x128xf32, #tpu.memory_space<vmem>>, vector<16x128xf32>
    tpu.vector_store %arg5[%c0_6, %c0_7], %7 {strides = array<i32>} : memref<16x128xf32, #tpu.memory_space<vmem>>, vector<16x128xf32>,
    return
  }
  func.func @transform_0(%arg0: i32, %arg1: i32) -> (i32, i32) {
    %c0_i32 = arith.constant 0 : i32
    %c0_i32_0 = arith.constant 0 : i32
    return %arg1, %c0_i32 : i32, i32
  }
  func.func @transform_1(%arg0: i32, %arg1: i32) -> (i32, i32) {
    %c0_i32 = arith.constant 0 : i32
    %c0_i32_0 = arith.constant 0 : i32
    return %c0_i32, %arg0 : i32, i32
  }
  func.func @transform_2(%arg0: i32, %arg1: i32) -> (i32, i32) {
    %c0_i32 = arith.constant 0 : i32
    %c0_i32_0 = arith.constant 0 : i32
    return %c0_i32, %arg0 : i32, i32
  }
  func.func @transform_3(%arg0: i32, %arg1: i32) -> (i32, i32) {
    %c0_i32 = arith.constant 0 : i32
    return %arg1, %arg0 : i32, i32
  }
}

</mosaic_0001>

<bundles_post_ra>
// kernel: tpu_custom_call.1
= control target key start
LH: loop header
LB: loop body
LE: loop exit
PB: predicated region body
PF: predicated region fallthrough
CT: control target
= control target key end

     0   :  { %8 = vsyncpa [#allocation3], 0  ;;  %s331_s0 = inlined_call_operand.hbm [shape: bf16[16,128], index: 0, kind: input, shape index: {}]   ;;  %s332_s1 = inlined_call_operand.hbm [shape: bf16[128,128], index: 1, kind: input, shape index: {}]   ;;  %s333_s2 = inlined_call_operand.vmem [shape: f32[1,128], index: 2, kind: input, shape index: {}]   ;;  %s334_s3 = inlined_call_operand.hbm [shape: f32[16,128], index: 3, kind: output, shape index: {}]  }
   0x1   :  { %9 = vsyncpa [#allocation6], 0 }
   0x2   :  { %10 = vsyncpa [#allocation4], 0  ;;  %s15_s14 = sshll.u32 %s331_s0, 4  ;;  %s292_s15 = smov [#allocation2]   ;;  %s16_s14 = int_to_ptr.hbm [resolvable:$true] %s15_s14 }
   0x3   :  { %s17_s16 = sshll.u32 %s292_s15, 4  ;;  %s28_s19 = sshll.u32 %s332_s1, 4  ;;  %s18_s16 = int_to_ptr.vmem [resolvable:$true] %s17_s16  ;;  %s29_s19 = int_to_ptr.hbm [resolvable:$true] %s28_s19 }
   0x4   :  { %s293_s20 = smov 64   ;;  %s294_s21 = smov 4  }
   0x5   :  { %23 = dma.hbm_to_vmem [thread:$0]  %s16_s14, 128, %s18_s16, [#allocation3], %s293_s20, %s293_s20, %s294_s21  }
   0x6   :  { %s295_s22 = smov [#allocation5]  }
   0x7   :  { %s30_s23 = sshll.u32 %s295_s22, 4  ;;  %s31_s23 = int_to_ptr.vmem [resolvable:$true] %s30_s23 }
   0x8   :  { %36 = dma.hbm_to_vmem [thread:$0]  %s29_s19, 1024, %s31_s23, [#allocation6], %s293_s20, %s293_s20, %s294_s21  }
   0x9   :  { %286 = dma.done.wait [#allocation3], 128  }
   0xa   :  { %287 = vsyncadd [#allocation3], 4294967168 }
   0xb   :  { %288 = dma.done.wait [#allocation6], 1024  }
   0xc   :  { %289 = vsyncadd [#allocation6], 4294966272  ;;  %v205_v0 = vld [vmem:[#allocation5 + $0x38] sm:$0xff]  ;;  %v204_v1 = vld [vmem:[#allocation5 + $0x30] sm:$0xff]  ;;  %s296_s24 = smov [#allocation7]   ;;  %s147_s28 = sshll.u32 %s334_s3, 4  ;;  %s148_s28 = int_to_ptr.hbm [resolvable:$true] %s147_s28 }
   0xd   :  { %123 = vmatpush.bf16.msra.mxu0 %v205_v0  ;;  %v203_v2 = vld [vmem:[#allocation5 + $0x28] sm:$0xff]  ;;  %v202_v3 = vld [vmem:[#allocation5 + $0x20] sm:$0xff]  ;;  %v201_v4 = vld [vmem:[#allocation5 + $0x18] sm:$0xff]  ;;  %s145_s25 = sshll.u32 %s296_s24, 4  ;;  %s297_s29 = smov 128   ;;  %s146_s25 = int_to_ptr.vmem [resolvable:$true] %s145_s25 }
   0xe   :  { %v200_v5 = vld [vmem:[#allocation5 + $0x10] sm:$0xff]  ;;  %v199_v6 = vld [vmem:[#allocation5 + $0x8] sm:$0xff]  ;;  %v198_v7 = vld [vmem:[#allocation5] sm:$0xff]  ;;  %s298_s30 = smov 8  }
   0xf   :  { %v197_v8 = vld [vmem:[#allocation2] sm:$0xff] }
  0x10   :  { %v213_v9 = vld [vmem:[%s333_s2] ss:$0 sm:$0xff] }
  0x11   :  { %124 = vmatpush.bf16.msra.mxu0 %v204_v1 }
  0x15   :  { %125 = vmatpush.bf16.msra.mxu0 %v203_v2 }
  0x19   :  { %126 = vmatpush.bf16.msra.mxu0 %v202_v3 }
  0x1d   :  { %127 = vmatpush.bf16.msra.mxu0 %v201_v4 }
  0x21   :  { %128 = vmatpush.bf16.msra.mxu0 %v200_v5 }
  0x25   :  { %129 = vmatpush.bf16.msra.mxu0 %v199_v6 }
  0x29   :  { %130 = vmatpush.bf16.msra.mxu0 %v198_v7 }
  0x2c   :  { %131 = vmatmul.bf16.vlgmr.msra.gmra.mxu0 %v197_v8 }
  0xa9   :  { %v132_v10 = vpop.f32.mrf.mxu0 }
  0xaa   :  { %v133_v11 = vadd.f32 %v213_v9, %v132_v10 }
  0xac   :  { %v137_v12 = vmax.f32 %v133_v11, 0.0 }
  0xae   :  { %139 = vst [vmem:[#allocation7] sm:$0xff] %v137_v12 }
  0xb1   :  { %v134_v13 = vpop.f32.mrf.mxu0 }
  0xb2   :  { %v135_v14 = vadd.f32 %v213_v9, %v134_v13 }
  0xb4   :  { %v138_v15 = vmax.f32 %v135_v14, 0.0 }
  0xb6   :  { %140 = vst [vmem:[#allocation7 + $0x8] sm:$0xff] %v138_v15 }
  0xb7   :  { %153 = dma.vmem_to_hbm [thread:$0]  %s146_s25, 256, %s148_s28, [#allocation4], %s297_s29, %s297_s29, %s298_s30  }
  0xb8   :  { %290 = dma.done.wait [#allocation4], 256  }
  0xb9   :  { %291 = vsyncadd [#allocation4], 4294967040 }
  0xba   :  { %158 = vsyncpa [#allocation3], 1 }
  0xbb   :  { %159 = vsyncpa [#allocation6], 1 }
  0xbc   :  { %160 = vsyncpa [#allocation4], 1 }

</bundles_post_ra>
